<compile_context>
chip_gen: v6e
topology: v6e:2x2x1
jax: 0.10.0
libtpu: 0.0.40
codegen_flags: <defaults>
</compile_context>

<pallas_src>
import functools

import jax
import jax.numpy as jnp
from jax.experimental import pallas as pl
from jax.experimental.pallas import tpu as pltpu

LANES = 128
MAX_TILE_ROWS = 4096  # 3 inputs x 2 buffers x 4096x128x4B = 12 MiB VMEM
VMEM_LIMIT_BYTES = 32 << 20  # safe headroom on v5e/v6e/v7x


def _mse_var_kernel(mu_ref, lv_ref, lb_ref, psum_ref, *,
                    var_weight, rows_total, tile_rows):
    i = pl.program_id(0)

    log_var = var_weight * lv_ref[...]
    diff = mu_ref[...] - lb_ref[...]
    loss = 0.5 * (jnp.exp(-log_var) * (diff * diff) + log_var)

    # Mask garbage rows from the partial last block (reads past the array).
    # Statically elided in the common case where the grid divides evenly.
    if rows_total % tile_rows != 0:
        row_ids = i * tile_rows + jax.lax.broadcasted_iota(
            jnp.int32, loss.shape, 0)
        loss = jnp.where(row_ids < rows_total, loss, 0.0)

    # VPU-only tree reduce of this tile to a single (8, 128) vreg.  The final
    # cross-lane/sublane reduce happens outside the kernel on the tiny
    # per-block partial-sum output (keeps the XLU out of the hot loop).
    psum_ref[0, :, :] = loss.reshape(-1, 8, LANES).sum(axis=0)


def mse_var(mu, log_var, label, var_weight=1.0):
    """Pallas equivalent of MSE_VAR.forward: returns a scalar (f32)."""
    assert mu.shape == log_var.shape == label.shape
    n_valid = int(mu.size)

    flats = [jnp.ravel(a).astype(jnp.float32) for a in (mu, log_var, label)]

    # Only pad when the element count is not a multiple of 8*128 (rare for
    # NCHW tensors).  Zero padding contributes exactly 0 to the sum.
    chunk = 8 * LANES
    n_pad = (-n_valid) % chunk
    if n_pad:
        flats = [jnp.pad(a, (0, n_pad)) for a in flats]
    rows = (n_valid + n_pad) // LANES           # multiple of 8
    slabs = [a.reshape(rows, LANES) for a in flats]

    tile_rows = min(MAX_TILE_ROWS, rows)        # multiple of 8, <= array rows
    num_blocks = pl.cdiv(rows, tile_rows)

    kernel = functools.partial(
        _mse_var_kernel,
        var_weight=float(var_weight),
        rows_total=rows,
        tile_rows=tile_rows,
    )

    in_block = pl.BlockSpec((tile_rows, LANES), lambda i: (i, 0))
    psums = pl.pallas_call(
        kernel,
        out_shape=jax.ShapeDtypeStruct((num_blocks, 8, LANES), jnp.float32),
        grid_spec=pltpu.PrefetchScalarGridSpec(
            num_scalar_prefetch=0,
            grid=(num_blocks,),
            in_specs=[in_block, in_block, in_block],
            out_specs=pl.BlockSpec((1, 8, LANES), lambda i: (i, 0, 0)),
        ),
        compiler_params=pltpu.CompilerParams(
            dimension_semantics=("parallel",),
            vmem_limit_bytes=VMEM_LIMIT_BYTES),
        cost_estimate=pl.CostEstimate(
            flops=5 * n_valid,
            transcendentals=n_valid,
            bytes_accessed=12 * n_valid),
    )(*slabs)

    # Tiny final reduction (num_blocks * 4 KiB) + mean normalization.
    return jnp.sum(psums) / jnp.float32(n_valid)


def _mse_var_ref(mu, log_var, label, var_weight=1.0):
    log_var = var_weight * log_var
    loss1 = jnp.exp(-log_var) * (mu - label) ** 2
    loss = 0.5 * (loss1 + log_var)
    return jnp.mean(loss)


if __name__ == "__main__":
    key = jax.random.PRNGKey(0)
    k1, k2, k3 = jax.random.split(key, 3)
    shape = (2, 4, 16, 16)  # NCHW, as the PyTorch forward implies
    mu = jax.random.normal(k1, shape, dtype=jnp.float32)
    log_var = 0.5 * jax.random.normal(k2, shape, dtype=jnp.float32)
    label = jax.random.normal(k3, shape, dtype=jnp.float32)

    var_weight = 1.0  # deterministic "parameter" from __init__ default

    out = jax.block_until_ready(mse_var(mu, log_var, label, var_weight))
    ref = _mse_var_ref(mu, log_var, label, var_weight)

    assert jnp.allclose(out, ref, rtol=1e-5, atol=1e-6), (out, ref)
    print("KERNEL_OK")
</pallas_src>

<mosaic_0001>
module attributes {stable_mosaic.version = 11 : i64} {
  func.func @_mse_var_kernel(%arg0: i32, %arg1: memref<16x128xf32, #tpu.memory_space<vmem>>, %arg2: memref<16x128xf32, #tpu.memory_space<vmem>>, %arg3: memref<16x128xf32, #tpu.memory_space<vmem>>, %arg4: memref<1x8x128xf32, #tpu.memory_space<vmem>>) attributes {dimension_semantics = [#tpu.dimension_semantics<parallel>], iteration_bounds = array<i64: 1>, scalar_prefetch = 0 : i64, scratch_operands = 0 : i64, tpu.core_type = #tpu.core_type<tc>, window_params = [{transform_indices = @transform_0, window_bounds = array<i64: 16, 128>}, {transform_indices = @transform_1, window_bounds = array<i64: 16, 128>}, {transform_indices = @transform_2, window_bounds = array<i64: 16, 128>}, {transform_indices = @transform_3, window_bounds = array<i64: 1, 8, 128>}]} {
    %c0 = arith.constant 0 : index
    %c0_0 = arith.constant 0 : index
    %0 = vector.load %arg2[%c0, %c0_0] : memref<16x128xf32, #tpu.memory_space<vmem>>, vector<16x128xf32>
    %cst = arith.constant 1.000000e+00 : f32
    %1 = vector.broadcast %cst : f32 to vector<16x128xf32>
    %2 = arith.mulf %1, %0 : vector<16x128xf32>
    %c0_1 = arith.constant 0 : index
    %c0_2 = arith.constant 0 : index
    %3 = vector.load %arg1[%c0_1, %c0_2] : memref<16x128xf32, #tpu.memory_space<vmem>>, vector<16x128xf32>
    %c0_3 = arith.constant 0 : index
    %c0_4 = arith.constant 0 : index
    %4 = vector.load %arg3[%c0_3, %c0_4] : memref<16x128xf32, #tpu.memory_space<vmem>>, vector<16x128xf32>
    %5 = arith.subf %3, %4 : vector<16x128xf32>
    %cst_5 = arith.constant 0.000000e+00 : f32
    %6 = vector.broadcast %cst_5 : f32 to vector<16x128xf32>
    %7 = arith.subf %6, %2 : vector<16x128xf32>
    %8 = math.exp %7 : vector<16x128xf32>
    %9 = arith.mulf %5, %5 : vector<16x128xf32>
    %10 = arith.mulf %8, %9 : vector<16x128xf32>
    %11 = arith.addf %10, %2 : vector<16x128xf32>
    %cst_6 = arith.constant 5.000000e-01 : f32
    %12 = vector.broadcast %cst_6 : f32 to vector<16x128xf32>
    %13 = arith.mulf %12, %11 : vector<16x128xf32>
    %14 = vector.shape_cast %13 : vector<16x128xf32> to vector<2x8x128xf32>
    %cst_7 = arith.constant dense<0.000000e+00> : vector<8x128xf32>
    %15 = vector.multi_reduction <add>, %14, %cst_7 [0] : vector<2x8x128xf32> to vector<8x128xf32>
    %c0_8 = arith.constant 0 : index
    %c0_9 = arith.constant 0 : index
    %c0_10 = arith.constant 0 : index
    %16 = vector.load %arg4[%c0_8, %c0_9, %c0_10] : memref<1x8x128xf32, #tpu.memory_space<vmem>>, vector<1x8x128xf32>
    %17 = vector.shape_cast %16 : vector<1x8x128xf32> to vector<8x128xf32>
    %18 = vector.shape_cast %15 : vector<8x128xf32> to vector<1x8x128xf32>
    tpu.vector_store %arg4[%c0_8, %c0_9, %c0_10], %18 {strides = array<i32>} : memref<1x8x128xf32, #tpu.memory_space<vmem>>, vector<1x8x128xf32>,
    return
  }
  func.func @transform_0(%arg0: i32) -> (i32, i32) {
    %c0_i32 = arith.constant 0 : i32
    %c0_i32_0 = arith.constant 0 : i32
    return %arg0, %c0_i32 : i32, i32
  }
  func.func @transform_1(%arg0: i32) -> (i32, i32) {
    %c0_i32 = arith.constant 0 : i32
    %c0_i32_0 = arith.constant 0 : i32
    return %arg0, %c0_i32 : i32, i32
  }
  func.func @transform_2(%arg0: i32) -> (i32, i32) {
    %c0_i32 = arith.constant 0 : i32
    %c0_i32_0 = arith.constant 0 : i32
    return %arg0, %c0_i32 : i32, i32
  }
  func.func @transform_3(%arg0: i32) -> (i32, i32, i32) {
    %c0_i32 = arith.constant 0 : i32
    %c0_i32_0 = arith.constant 0 : i32
    %c0_i32_1 = arith.constant 0 : i32
    return %arg0, %c0_i32, %c0_i32_0 : i32, i32, i32
  }
}

</mosaic_0001>

<bundles_post_ra>
// kernel: tpu_custom_call.1
= control target key start
LH: loop header
LB: loop body
LE: loop exit
PB: predicated region body
PF: predicated region fallthrough
CT: control target
= control target key end

     0   :  { %8 = vsyncpa [#allocation3], 0  ;;  %s230_s0 = inlined_call_operand.hbm [shape: f32[16,128], index: 0, kind: input, shape index: {}]   ;;  %s231_s1 = inlined_call_operand.hbm [shape: f32[16,128], index: 1, kind: input, shape index: {}]   ;;  %s232_s2 = inlined_call_operand.hbm [shape: f32[16,128], index: 2, kind: input, shape index: {}]   ;;  %s233_s3 = inlined_call_operand.hbm [shape: f32[1,8,128], index: 3, kind: output, shape index: {}]  }
   0x1   :  { %9 = vsyncpa [#allocation6], 0 }
   0x2   :  { %10 = vsyncpa [#allocation4], 0  ;;  %s192_s12 = smov [#allocation5]   ;;  %s193_s14 = smov [#allocation2]  }
   0x3   :  { %s28_s13 = sshll.u32 %s192_s12, 4  ;;  %s16_s15 = sshll.u32 %s193_s14, 4  ;;  %s29_s13 = int_to_ptr.vmem [resolvable:$true] %s28_s13  ;;  %s17_s15 = int_to_ptr.vmem [resolvable:$true] %s16_s15 }
   0x4   :  { %s114_s16 = scalar_lea.vmem %s29_s13, 256  ;;  %p119_p1 = scmp.lt.s32.totalorder %s29_s13, %s29_s13 }
   0x5   :  { %p115_p0 = scmp.ne.s32.totalorder %s29_s13, %s114_s16  ;;  %p120_p2 = scmp.lt.s32.totalorder %s114_s16, %s114_s16 }
   0x7   :  { %p121_p3 = por %p120_p2, %p119_p1 }
   0x9   :  { %p122_p4 = pnand %p121_p3, %p115_p0 }
   0xb   :  { %125 = shalt.err (!%p122_p4)
}
   0xc   :  { %s194_s17 = smov 128   ;;  %s195_s18 = smov 8  }
   0xd   :  { %34 = dma.hbm_to_vmem [thread:$0]  %s231_s1, 256, %s29_s13, [#allocation6], %s194_s17, %s194_s17, %s195_s18  }
   0xe   :  { %s134_s21 = scalar_lea.vmem %s17_s15, 256  ;;  %p139_p6 = scmp.lt.s32.totalorder %s17_s15, %s17_s15 }
   0xf   :  { %p135_p5 = scmp.ne.s32.totalorder %s17_s15, %s134_s21  ;;  %p140_p7 = scmp.lt.s32.totalorder %s134_s21, %s134_s21 }
  0x11   :  { %p141_p8 = por %p140_p7, %p139_p6 }
  0x13   :  { %p142_p9 = pnand %p141_p8, %p135_p5 }
  0x15   :  { %145 = shalt.err (!%p142_p9)
}
  0x16   :  { %22 = dma.hbm_to_vmem [thread:$0]  %s230_s0, 256, %s17_s15, [#allocation3], %s194_s17, %s194_s17, %s195_s18  }
  0x17   :  { %s196_s24 = smov [#allocation7]  }
  0x18   :  { %s40_s25 = sshll.u32 %s196_s24, 4  ;;  %s41_s25 = int_to_ptr.vmem [resolvable:$true] %s40_s25 }
  0x19   :  { %s154_s26 = scalar_lea.vmem %s41_s25, 256  ;;  %p159_p11 = scmp.lt.s32.totalorder %s41_s25, %s41_s25 }
  0x1a   :  { %p155_p10 = scmp.ne.s32.totalorder %s41_s25, %s154_s26  ;;  %p160_p12 = scmp.lt.s32.totalorder %s154_s26, %s154_s26 }
  0x1c   :  { %p161_p13 = por %p160_p12, %p159_p11 }
  0x1e   :  { %p162_p0 = pnand %p161_p13, %p155_p10 }
  0x20   :  { %165 = shalt.err (!%p162_p0)
}
  0x21   :  { %46 = dma.hbm_to_vmem [thread:$0]  %s232_s2, 256, %s41_s25, [#allocation6], %s194_s17, %s194_s17, %s195_s18  }
  0x22   :  { %186 = dma.done.wait [#allocation3], 256  }
  0x23   :  { %187 = vsyncadd [#allocation3], 4294967040 }
  0x24   :  { %188 = dma.done.wait [#allocation6], 512  }
  0x25   :  { %189 = vsyncadd [#allocation6], 4294966784  ;;  %v56_v0 = vld [vmem:[#allocation5] sm:$0xff]  ;;  %v57_v1 = vld [vmem:[#allocation5 + $0x8] sm:$0xff]  ;;  %s197_s0 = smov [#allocation8]  }
  0x26   :  { %v64_v2 = vsub.f32 0.0, %v56_v0  ;;  %v65_v3 = vsub.f32 0.0, %v57_v1  ;;  %v58_v6 = vld [vmem:[#allocation2] sm:$0xff]  ;;  %v59_v8 = vld [vmem:[#allocation2 + $0x8] sm:$0xff]  ;;  %s86_s2 = sshll.u32 %s197_s0, 4  ;;  %s87_s2 = int_to_ptr.vmem [resolvable:$true] %s86_s2 }
  0x27   :  { %v60_v7 = vld [vmem:[#allocation7] sm:$0xff]  ;;  %v61_v9 = vld [vmem:[#allocation7 + $0x8] sm:$0xff]  ;;  %s166_s28 = scalar_lea.vmem %s87_s2, 128  ;;  %p171_p2 = scmp.lt.s32.totalorder %s87_s2, %s87_s2 }
  0x28   :  { %v66_v4 = vmul.f32 1.442695, %v64_v2  ;;  %v68_v5 = vmul.f32 1.442695, %v65_v3  ;;  %v62_v10 = vsub.f32 %v58_v6, %v60_v7  ;;  %v63_v11 = vsub.f32 %v59_v8, %v61_v9  ;;  %p167_p1 = scmp.ne.s32.totalorder %s87_s2, %s166_s28  ;;  %p172_p3 = scmp.lt.s32.totalorder %s166_s28, %s166_s28 }
  0x2a   :  { %102 = vpow2.f32 %v66_v4  ;;  %v70_v12 = vmul.f32 %v62_v10, %v62_v10  ;;  %v71_v13 = vmul.f32 %v63_v11, %v63_v11  ;;  %p173_p4 = por %p172_p3, %p171_p2 }
  0x2b   :  { %104 = vpow2.f32 %v68_v5 }
  0x2c   :  { %p174_p5 = pnand %p173_p4, %p167_p1 }
  0x37   :  { %v103_v14 = vpop.eup %102 }
  0x38   :  { %v105_v15 = vpop.eup %104  ;;  %v72_v16 = vmul.f32 %v103_v14, %v70_v12 }
  0x39   :  { %v73_v17 = vmul.f32 %v105_v15, %v71_v13 }
  0x3a   :  { %v74_v18 = vadd.f32 %v72_v16, %v56_v0 }
  0x3b   :  { %v75_v19 = vadd.f32 %v73_v17, %v57_v1 }
  0x3c   :  { %v76_v20 = vmul.f32 0.5, %v74_v18 }
  0x3d   :  { %v77_v21 = vmul.f32 0.5, %v75_v19 }
  0x3f   :  { %v78_v22 = vadd.f32 %v77_v21, %v76_v20 }
  0x41   :  { %79 = vst [vmem:[#allocation8] sm:$0xff] %v78_v22 }
  0x42   :  { %177 = shalt.err (!%p174_p5)
}
  0x43   :  { %89 = dma.vmem_to_hbm [thread:$0]  %s87_s2, 128, %s233_s3, [#allocation4]  }
  0x44   :  { %190 = dma.done.wait [#allocation4], 128  }
  0x45   :  { %191 = vsyncadd [#allocation4], 4294967168 }
  0x46   :  { %93 = vsyncpa [#allocation3], 1 }
  0x47   :  { %94 = vsyncpa [#allocation6], 1 }
  0x48   :  { %95 = vsyncpa [#allocation4], 1 }

</bundles_post_ra>
